<compile_context>
chip_gen: v7x
topology: tpu7x:2x2x1
jax: 0.10.0
libtpu: 0.0.40
codegen_flags: <defaults>
</compile_context>

<pallas_src>
import jax
import jax.numpy as jnp
from jax.experimental import pallas as pl
from jax.experimental.pallas import tpu as pltpu

HIDDEN = 64     # fixed by the module definition
LANE = 128      # TPU lane width
SUBLANE = 8


def _round_up(x, m):
    return (x + m - 1) // m * m


def _mlp_kernel(x_ref, w1_ref, b1_ref, w2_ref, b2_ref, o_ref):
    # Layer 1: (tb, IN) @ (IN, 128) on the MXU, f32 accumulation.  x is cast to
    # the weight dtype in-kernel (free VPU cast; avoids an extra HBM pass over
    # x in the wrapper when use_bf16=True).
    x = x_ref[...]
    h = jnp.dot(x.astype(w1_ref.dtype), w1_ref[...],
                preferred_element_type=jnp.float32)
    h = jax.nn.sigmoid(h + b1_ref[...])            # exp -> EUP slot, stays f32
    # Layer 2: (tb, 128) @ (128, OUT).  OUT stays narrow: the masked store on a
    # 16-lane output is much cheaper than writing an 8x padded f32 slab to HBM.
    out = jnp.dot(h.astype(w2_ref.dtype), w2_ref[...],
                  preferred_element_type=jnp.float32)
    o_ref[...] = (out + b2_ref[...]).astype(o_ref.dtype)


def _prepare_params(w1, b1, w2, b2, use_bf16):
    """Pad hidden 64 -> 128 (exact: sigmoid(0)=0.5 multiplies all-zero padded
    rows of W2); do NOT pad the output dim.  Optionally downcast the tiny,
    VMEM-resident weights to bf16 (native MXU operand on v5e/v6e/v7x); biases,
    accumulation and the sigmoid stay f32."""
    b1 = b1.reshape(1, -1)
    b2 = b2.reshape(1, -1)
    hid_p = _round_up(HIDDEN, LANE)
    w1p = jnp.pad(w1, ((0, 0), (0, hid_p - HIDDEN)))
    b1p = jnp.pad(b1, ((0, 0), (0, hid_p - HIDDEN)))
    w2p = jnp.pad(w2, ((0, hid_p - HIDDEN), (0, 0)))
    if use_bf16:
        w1p = w1p.astype(jnp.bfloat16)
        w2p = w2p.astype(jnp.bfloat16)
    return w1p, b1p, w2p, b2


def mlp_forward(x, w1, b1, w2, b2, *, block_b=1024, use_bf16=False):
    """x: (B, IN); w1: (IN, 64); b1: (64,)/(1,64); w2: (64, OUT); b2: (OUT,)/(1,OUT)."""
    B, IN = x.shape
    OUT = w2.shape[1]

    # Weight padding/casting is tiny; under jit with constant params it folds
    # away.  For repeated calls, prepare once and reuse.
    w1p, b1p, w2p, b2p = _prepare_params(w1, b1, w2, b2, use_bf16)

    # Batch tile: multiple of 8, capped at block_b.  No wrapper-side padding of
    # x — the grid uses cdiv and Pallas masks the partial last block.
    tb = min(block_b, _round_up(B, SUBLANE))
    if pl.cdiv(B, tb) < 2 and B > SUBLANE:
        # Guarantee >= 2 grid steps: pipelining overlap + v7x megacore sharding.
        tb = _round_up(pl.cdiv(B, 2), SUBLANE)
    grid = (pl.cdiv(B, tb),)

    # Advisory mem-bound cost (x read + out write + resident weights).
    bytes_accessed = (x.size * x.dtype.itemsize
                      + B * OUT * x.dtype.itemsize
                      + w1p.size * w1p.dtype.itemsize
                      + w2p.size * w2p.dtype.itemsize
                      + b1p.size * b1p.dtype.itemsize
                      + b2p.size * b2p.dtype.itemsize)
    cost = pl.CostEstimate(
        flops=2 * B * (IN * HIDDEN + HIDDEN * OUT),
        transcendentals=B * HIDDEN,
        bytes_accessed=int(bytes_accessed))

    out = pl.pallas_call(
        _mlp_kernel,
        out_shape=jax.ShapeDtypeStruct((B, OUT), x.dtype),
        grid_spec=pltpu.PrefetchScalarGridSpec(
            num_scalar_prefetch=0,
            grid=grid,
            in_specs=[
                pl.BlockSpec((tb, IN), lambda i: (i, 0)),    # batch-tiled x
                pl.BlockSpec(w1p.shape, lambda i: (0, 0)),   # VMEM-resident
                pl.BlockSpec(b1p.shape, lambda i: (0, 0)),
                pl.BlockSpec(w2p.shape, lambda i: (0, 0)),
                pl.BlockSpec(b2p.shape, lambda i: (0, 0)),
            ],
            out_specs=pl.BlockSpec((tb, OUT), lambda i: (i, 0)),  # natural width
        ),
        compiler_params=pltpu.CompilerParams(
            dimension_semantics=("parallel",),   # megacore sharding on v7x
        ),
        cost_estimate=cost,
    )(x, w1p, b1p, w2p, b2p)

    return out


def reference_mlp(x, w1, b1, w2, b2):
    h = jax.nn.sigmoid(x @ w1 + b1.reshape(1, -1))
    return h @ w2 + b2.reshape(1, -1)


if __name__ == "__main__":
    # input_size=32, output_size=16, hidden=64 (fixed by the module).
    IN, OUT = 32, 16

    key = jax.random.PRNGKey(0)
    kx, kw1, kb1, kw2, kb2 = jax.random.split(key, 5)

    # Deterministic parameter init (PyTorch-like uniform scaling).
    w1 = jax.random.uniform(kw1, (IN, HIDDEN), jnp.float32, -1.0, 1.0) / jnp.sqrt(IN)
    b1 = jax.random.uniform(kb1, (1, HIDDEN), jnp.float32, -1.0, 1.0) / jnp.sqrt(IN)
    w2 = jax.random.uniform(kw2, (HIDDEN, OUT), jnp.float32, -1.0, 1.0) / jnp.sqrt(HIDDEN)
    b2 = jax.random.uniform(kb2, (1, OUT), jnp.float32, -1.0, 1.0) / jnp.sqrt(HIDDEN)

    # Divisible batch: grid=(4,) -> real multi-step pipelining / megacore work.
    B = 256
    x = jax.random.normal(kx, (B, IN), dtype=jnp.float32)
    preds = jax.block_until_ready(mlp_forward(x, w1, b1, w2, b2, block_b=64))
    ref = reference_mlp(x, w1, b1, w2, b2)
    assert preds.shape == (B, OUT)
    assert jnp.allclose(preds, ref, atol=1e-4, rtol=1e-4)

    # Non-divisible batch: exercises the masked partial last block (cdiv grid,
    # no wrapper-side padding of x).
    B2 = 200
    x2 = jax.random.normal(kx, (B2, IN), dtype=jnp.float32)
    preds2 = jax.block_until_ready(mlp_forward(x2, w1, b1, w2, b2, block_b=64))
    ref2 = reference_mlp(x2, w1, b1, w2, b2)
    assert preds2.shape == (B2, OUT)
    assert jnp.allclose(preds2, ref2, atol=1e-4, rtol=1e-4)

    # bf16-weight path: x stays f32 in HBM, cast happens in-kernel.
    preds_bf16 = jax.block_until_ready(
        mlp_forward(x, w1, b1, w2, b2, block_b=64, use_bf16=True))
    assert jnp.allclose(preds_bf16, ref, atol=5e-2, rtol=5e-2)

    print("KERNEL_OK")
</pallas_src>

<mosaic_0001>
module attributes {stable_mosaic.version = 11 : i64} {
  func.func @_mlp_kernel(%arg0: i32, %arg1: memref<64x32xf32, #tpu.memory_space<vmem>>, %arg2: memref<32x128xf32, #tpu.memory_space<vmem>>, %arg3: memref<1x128xf32, #tpu.memory_space<vmem>>, %arg4: memref<128x16xf32, #tpu.memory_space<vmem>>, %arg5: memref<1x16xf32, #tpu.memory_space<vmem>>, %arg6: memref<64x16xf32, #tpu.memory_space<vmem>>) attributes {dimension_semantics = [#tpu.dimension_semantics<parallel>], iteration_bounds = array<i64: 4>, scalar_prefetch = 0 : i64, scratch_operands = 0 : i64, tpu.core_type = #tpu.core_type<tc>, window_params = [{transform_indices = @transform_0, window_bounds = array<i64: 64, 32>}, {pipeline_mode = #tpu.pipeline_mode<synchronous>, transform_indices = @transform_1, window_bounds = array<i64: 32, 128>}, {pipeline_mode = #tpu.pipeline_mode<synchronous>, transform_indices = @transform_2, window_bounds = array<i64: 1, 128>}, {pipeline_mode = #tpu.pipeline_mode<synchronous>, transform_indices = @transform_3, window_bounds = array<i64: 128, 16>}, {pipeline_mode = #tpu.pipeline_mode<synchronous>, transform_indices = @transform_4, window_bounds = array<i64: 1, 16>}, {transform_indices = @transform_5, window_bounds = array<i64: 64, 16>}]} {
    %c0 = arith.constant 0 : index
    %c0_0 = arith.constant 0 : index
    %0 = vector.load %arg1[%c0, %c0_0] : memref<64x32xf32, #tpu.memory_space<vmem>>, vector<64x32xf32>
    %c0_1 = arith.constant 0 : index
    %c0_2 = arith.constant 0 : index
    %1 = vector.load %arg2[%c0_1, %c0_2] : memref<32x128xf32, #tpu.memory_space<vmem>>, vector<32x128xf32>
    %cst = arith.constant dense<0.000000e+00> : vector<64x128xf32>
    %2 = tpu.matmul %0, %1, %cst {dimension_numbers = #tpu.dot_dimension_numbers<[1], [0], [0], [1], [0, 0, 1, 1], [], []>} : vector<64x32xf32>, vector<32x128xf32>, vector<64x128xf32> -> vector<64x128xf32>
    %c0_3 = arith.constant 0 : index
    %c0_4 = arith.constant 0 : index
    %3 = vector.load %arg3[%c0_3, %c0_4] : memref<1x128xf32, #tpu.memory_space<vmem>>, vector<1x128xf32>
    %4 = vector.broadcast %3 : vector<1x128xf32> to vector<64x128xf32>
    %5 = arith.addf %2, %4 : vector<64x128xf32>
    %6 = arith.negf %5 : vector<64x128xf32>
    %7 = math.exp %6 : vector<64x128xf32>
    %cst_5 = arith.constant 1.000000e+00 : f32
    %8 = vector.broadcast %cst_5 : f32 to vector<64x128xf32>
    %9 = arith.addf %8, %7 : vector<64x128xf32>
    %10 = arith.divf %8, %9 : vector<64x128xf32>
    %c0_6 = arith.constant 0 : index
    %c0_7 = arith.constant 0 : index
    %11 = vector.load %arg4[%c0_6, %c0_7] : memref<128x16xf32, #tpu.memory_space<vmem>>, vector<128x16xf32>
    %cst_8 = arith.constant dense<0.000000e+00> : vector<64x16xf32>
    %12 = tpu.matmul %10, %11, %cst_8 {dimension_numbers = #tpu.dot_dimension_numbers<[1], [0], [0], [1], [0, 0, 1, 1], [], []>} : vector<64x128xf32>, vector<128x16xf32>, vector<64x16xf32> -> vector<64x16xf32>
    %c0_9 = arith.constant 0 : index
    %c0_10 = arith.constant 0 : index
    %13 = vector.load %arg5[%c0_9, %c0_10] : memref<1x16xf32, #tpu.memory_space<vmem>>, vector<1x16xf32>
    %14 = vector.broadcast %13 : vector<1x16xf32> to vector<64x16xf32>
    %15 = arith.addf %12, %14 : vector<64x16xf32>
    %c0_11 = arith.constant 0 : index
    %c0_12 = arith.constant 0 : index
    %16 = vector.load %arg6[%c0_11, %c0_12] : memref<64x16xf32, #tpu.memory_space<vmem>>, vector<64x16xf32>
    tpu.vector_store %arg6[%c0_11, %c0_12], %15 {strides = array<i32>} : memref<64x16xf32, #tpu.memory_space<vmem>>, vector<64x16xf32>,
    return
  }
  func.func @transform_0(%arg0: i32) -> (i32, i32) {
    %c0_i32 = arith.constant 0 : i32
    %c0_i32_0 = arith.constant 0 : i32
    return %arg0, %c0_i32 : i32, i32
  }
  func.func @transform_1(%arg0: i32) -> (i32, i32) {
    %c0_i32 = arith.constant 0 : i32
    %c0_i32_0 = arith.constant 0 : i32
    %c0_i32_1 = arith.constant 0 : i32
    return %c0_i32, %c0_i32_0 : i32, i32
  }
  func.func @transform_2(%arg0: i32) -> (i32, i32) {
    %c0_i32 = arith.constant 0 : i32
    %c0_i32_0 = arith.constant 0 : i32
    %c0_i32_1 = arith.constant 0 : i32
    return %c0_i32, %c0_i32_0 : i32, i32
  }
  func.func @transform_3(%arg0: i32) -> (i32, i32) {
    %c0_i32 = arith.constant 0 : i32
    %c0_i32_0 = arith.constant 0 : i32
    %c0_i32_1 = arith.constant 0 : i32
    return %c0_i32, %c0_i32_0 : i32, i32
  }
  func.func @transform_4(%arg0: i32) -> (i32, i32) {
    %c0_i32 = arith.constant 0 : i32
    %c0_i32_0 = arith.constant 0 : i32
    %c0_i32_1 = arith.constant 0 : i32
    return %c0_i32, %c0_i32_0 : i32, i32
  }
  func.func @transform_5(%arg0: i32) -> (i32, i32) {
    %c0_i32 = arith.constant 0 : i32
    %c0_i32_0 = arith.constant 0 : i32
    return %arg0, %c0_i32 : i32, i32
  }
}

</mosaic_0001>

<bundles_post_ra>
// kernel: tpu_custom_call.1
= control target key start
LH: loop header
LB: loop body
LE: loop exit
PB: predicated region body
PF: predicated region fallthrough
CT: control target
= control target key end

     0   :  { %s881_s18 = smov 0   ;;  %s987_s0 = inlined_call_operand.vmem [shape: f32[256,32], index: 0, kind: input, shape index: {}]   ;;  %s988_s1 = inlined_call_operand.vmem [shape: f32[32,128], index: 1, kind: input, shape index: {}]   ;;  %s989_s2 = inlined_call_operand.vmem [shape: f32[1,128], index: 2, kind: input, shape index: {}]   ;;  %s990_s3 = inlined_call_operand.vmem [shape: f32[128,16], index: 3, kind: input, shape index: {}]   ;;  %s991_s4 = inlined_call_operand.vmem [shape: f32[1,16], index: 4, kind: input, shape index: {}]   ;;  %s992_s5 = inlined_call_operand.vmem [shape: f32[256,16], index: 5, kind: output, shape index: {}]  }
   0x1 LB: > { %s618_s19 = sadd.s32 4294967295, %s849_s18   ;;  %p622_p0 = scmp.ge.s32.totalorder %s849_s18, 1  ;;  %s849_s18 = sphi %s881_s18, %s15_s18  }
   0x2   : > { %p188_p1 = scmp.lt.s32.totalorder %s849_s18, 5 }
   0x4   : > { %p189_p2 = pnand %p622_p0, %p188_p1 }
   0x5   : > { %v236_v0 = vld [vmem:[%s988_s1] sm:$0xff] (!%p189_p2)  ;;  %v237_v1 = vld [vmem:[%s988_s1 + $0x8] sm:$0xff] (!%p189_p2)  ;;  %v238_v2 = vld [vmem:[%s988_s1 + $0x10] sm:$0xff] (!%p189_p2)  ;;  %s623_s26 = sshll.u32 (!%p189_p2), %s618_s19, 3  ;;  %vm247_vm0 = vcmask (!%p189_p2), 261120   ;;  %vm553_vm1 = vcmask (!%p189_p2), 130048  }
   0x6   : > { %192 = sbr.rel (%p189_p2) target bundleno = 490 (0x1ea), region = 40  ;;  %v747_v3 = vpack.c.bf16 (!%p189_p2), %v237_v1, %v236_v0  ;;  %v239_v4 = vld [vmem:[%s988_s1 + $0x18] sm:$0xff] (!%p189_p2)  ;;  %p217_p3 = scmp.lt.s32.totalorder (!%p189_p2), %s623_s26, 31  ;;  %v425_v5 = vld [vmem:[%s990_s3] sm:$0xff] (!%p189_p2)  ;;  %v426_v6 = vld [vmem:[%s990_s3 + $0x8] sm:$0xff] (!%p189_p2) }
   0x7   : > { %v751_v7 = vpack.c.bf16 (!%p189_p2), %v239_v4, %v238_v2  ;;  %v755_v8 = vpack.c.bf16 (!%p189_p2), %v426_v6, %v425_v5  ;;  %v427_v17 = vld [vmem:[%s990_s3 + $0x10] sm:$0xff] (!%p189_p2)  ;;  %v428_v18 = vld [vmem:[%s990_s3 + $0x18] sm:$0xff] (!%p189_p2)  ;;  %v429_v20 = vld [vmem:[%s990_s3 + $0x20] sm:$0xff] (!%p189_p2) }
   0x8   : > { %748 = vmatprep.subr.bf16.mxu0 (!%p189_p2), %v747_v3  ;;  %v759_v19 = vpack.c.bf16 (!%p189_p2), %v428_v18, %v427_v17  ;;  %v430_v21 = vld [vmem:[%s990_s3 + $0x28] sm:$0xff] (!%p189_p2)  ;;  %v431_v23 = vld [vmem:[%s990_s3 + $0x30] sm:$0xff] (!%p189_p2)  ;;  %v432_v24 = vld [vmem:[%s990_s3 + $0x38] sm:$0xff] (!%p189_p2) }
   0x9   : > { %750 = vmatpush3.bf16.msra.mxu0 (!%p189_p2), %v747_v3  ;;  %787 = vmatprep.subr.bf16.mxu1 (!%p189_p2), %v755_v8  ;;  %v763_v22 = vpack.c.bf16 (!%p189_p2), %v430_v21, %v429_v20  ;;  %v767_v25 = vpack.c.bf16 (!%p189_p2), %v432_v24, %v431_v23  ;;  %v433_v26 = vld [vmem:[%s990_s3 + $0x40] sm:$0xff] (!%p189_p2)  ;;  %v434_v27 = vld [vmem:[%s990_s3 + $0x48] sm:$0xff] (!%p189_p2)  ;;  %v435_v29 = vld [vmem:[%s990_s3 + $0x50] sm:$0xff] (!%p189_p2) }
   0xa   : > { %752 = vmatprep.subr.bf16.mxu0 (!%p189_p2), %v751_v7  ;;  %795 = vmatpush3.bf16.msra.mxu1 (!%p189_p2), %v755_v8  ;;  %v771_v28 = vpack.c.bf16 (!%p189_p2), %v434_v27, %v433_v26  ;;  %v436_v30 = vld [vmem:[%s990_s3 + $0x58] sm:$0xff] (!%p189_p2)  ;;  %v437_v32 = vld [vmem:[%s990_s3 + $0x60] sm:$0xff] (!%p189_p2)  ;;  %v438_v33 = vld [vmem:[%s990_s3 + $0x68] sm:$0xff] (!%p189_p2) }
   0xb   : > { %788 = vmatprep.subr.bf16.mxu1 (!%p189_p2), %v759_v19  ;;  %v775_v31 = vpack.c.bf16 (!%p189_p2), %v436_v30, %v435_v29  ;;  %v779_v34 = vpack.c.bf16 (!%p189_p2), %v438_v33, %v437_v32  ;;  %v439_v35 = vld [vmem:[%s990_s3 + $0x70] sm:$0xff] (!%p189_p2)  ;;  %v440_v36 = vld [vmem:[%s990_s3 + $0x78] sm:$0xff] (!%p189_p2)  ;;  %v627_v38 = vld [vmem:[%s989_s2] ss:$0 sm:$0xff] (!%p189_p2) }
   0xc   : > { %v783_v37 = vpack.c.bf16 (!%p189_p2), %v440_v36, %v439_v35  ;;  %v644_v23 = vld [vmem:[%s991_s4] ss:$0 sm:$0xff] (!%p189_p2) }
   0xd   : > { %s994_s26 = smov (!%p217_p3, %s623_s26), 31  ;;  %754 = vmatpush3.bf16.msra.mxu0 %v751_v7 }
   0xe   : > { %s624_s8 = sshll.u32 %s994_s26, 3  ;;  %756 = vmatprep.subr.bf16.mxu0 %v755_v8  ;;  %796 = vmatpush3.bf16.msra.mxu1 %v759_v19 }
   0xf   : > { %s220_s11 = scalar_lea.vmem %s987_s0, %s624_s8  ;;  %789 = vmatprep.subr.bf16.mxu1 %v763_v22  ;;  %s226_s25 = scalar_lea.vmem %s992_s5, %s624_s8 }
  0x10   : > { %v228_v9 = vld [vmem:[%s220_s11] sm:$0xff]  ;;  %v229_v10 = vld [vmem:[%s220_s11 + $0x8] sm:$0xff]  ;;  %v230_v11 = vld [vmem:[%s220_s11 + $0x10] sm:$0xff] }
  0x11   : > { %691 = vmatprep.mubr.msk.f32.mxu0 %vm247_vm0, %v228_v9  ;;  %v231_v12 = vld [vmem:[%s220_s11 + $0x18] sm:$0xff]  ;;  %v232_v13 = vld [vmem:[%s220_s11 + $0x20] sm:$0xff]  ;;  %v233_v14 = vld [vmem:[%s220_s11 + $0x28] sm:$0xff] }
  0x12   : > { %692 = vmatmul.mubr.msk.f32.vlgmr.msra.gmra.mrb[0].mxu0 %vm247_vm0, %v229_v10  ;;  %v234_v15 = vld [vmem:[%s220_s11 + $0x30] sm:$0xff]  ;;  %v235_v16 = vld [vmem:[%s220_s11 + $0x38] sm:$0xff]  ;;  %797 = vmatpush3.bf16.msra.mxu1 %v763_v22 }
  0x13   : > { %694 = vmatprep.mubr.msk.f32.mxu0 %vm247_vm0, %v230_v11  ;;  %758 = vmatpush3.bf16.msra.mxu0 %v755_v8 }
  0x14   : > { %760 = vmatprep.subr.bf16.mxu0 %v759_v19  ;;  %790 = vmatprep.subr.bf16.mxu1 %v767_v25 }
  0x16   : > { %695 = vmatmul.mubr.msk.f32.gmra.mrb[2].mxu0 %vm247_vm0, %v231_v12  ;;  %798 = vmatpush3.bf16.msra.mxu1 %v767_v25 }
  0x17   : > { %697 = vmatprep.mubr.msk.f32.mxu0 %vm247_vm0, %v232_v13  ;;  %762 = vmatpush3.bf16.msra.mxu0 %v759_v19 }
  0x18   : > { %764 = vmatprep.subr.bf16.mxu0 %v763_v22  ;;  %791 = vmatprep.subr.bf16.mxu1 %v771_v28 }
  0x1a   : > { %698 = vmatmul.mubr.msk.f32.gmra.mrb[4].mxu0 %vm247_vm0, %v233_v14  ;;  %799 = vmatpush3.bf16.msra.mxu1 %v771_v28 }
  0x1b   : > { %700 = vmatprep.mubr.msk.f32.mxu0 %vm247_vm0, %v234_v15  ;;  %766 = vmatpush3.bf16.msra.mxu0 %v763_v22 }
  0x1c   : > { %768 = vmatprep.subr.bf16.mxu0 %v767_v25  ;;  %792 = vmatprep.subr.bf16.mxu1 %v775_v31 }
  0x1e   : > { %701 = vmatmul.mubr.msk.f32.gmra.mrb[6].mxu0 %vm247_vm0, %v235_v16  ;;  %800 = vmatpush3.bf16.msra.mxu1 %v775_v31 }
  0x1f   : > { %770 = vmatpush3.bf16.msra.mxu0 %v767_v25  ;;  %793 = vmatprep.subr.bf16.mxu1 %v779_v34 }
  0x20   : > { %772 = vmatprep.subr.bf16.mxu0 %v771_v28 }
  0x22   : > { %801 = vmatpush3.bf16.msra.mxu1 %v779_v34 }
  0x23   : > { %774 = vmatpush3.bf16.msra.mxu0 %v771_v28  ;;  %794 = vmatprep.subr.bf16.mxu1 %v783_v37 }
  0x24   : > { %776 = vmatprep.subr.bf16.mxu0 %v775_v31 }
  0x26   : > { %802 = vmatpush3.bf16.msra.mxu1 %v783_v37 }
  0x27   : > { %778 = vmatpush3.bf16.msra.mxu0 %v775_v31 }
  0x28   : > { %780 = vmatprep.subr.bf16.mxu0 %v779_v34 }
  0x2b   : > { %782 = vmatpush3.bf16.msra.mxu0 %v779_v34 }
  0x2c   : > { %784 = vmatprep.subr.bf16.mxu0 %v783_v37 }
  0x2f   : > { %786 = vmatpush3.bf16.msra.mxu0 %v783_v37 }
  0xe5   : > { %v693_v39 = vpop.f32.mrb[0].mxu0 }
  0xe6   : > { %v344_v40 = vadd.f32 %v693_v39, %v627_v38  ;;  %v338_v41 = vpop.f32.mrb[1].mxu0 }
  0xe7   : > { %v339_v42 = vadd.f32 %v627_v38, %v338_v41 }
  0xe8   : > { %v637_v43 = vmul.f32 -1.442695, %v344_v40 }
  0xe9   : > { %v636_v44 = vmul.f32 -1.442695, %v339_v42  ;;  %v696_v45 = vpop.f32.mrb[2].mxu0 }
  0xea   : > { %811 = vpow2.f32 %v637_v43  ;;  %v354_v46 = vadd.f32 %v696_v45, %v627_v38  ;;  %v348_v47 = vpop.f32.mrb[3].mxu0 }
  0xeb   : > { %813 = vpow2.f32 %v636_v44  ;;  %v349_v48 = vadd.f32 %v627_v38, %v348_v47 }
  0xec   : > { %v639_v49 = vmul.f32 -1.442695, %v354_v46 }
  0xed   : > { %v638_v50 = vmul.f32 -1.442695, %v349_v48  ;;  %v699_v51 = vpop.f32.mrb[4].mxu0 }
  0xee   : > { %815 = vpow2.f32 %v639_v49  ;;  %v364_v52 = vadd.f32 %v699_v51, %v627_v38  ;;  %v358_v53 = vpop.f32.mrb[5].mxu0 }
  0xef   : > { %817 = vpow2.f32 %v638_v50  ;;  %v359_v54 = vadd.f32 %v627_v38, %v358_v53 }
  0xf0   : > { %v641_v55 = vmul.f32 -1.442695, %v364_v52 }
  0xf1   : > { %v640_v56 = vmul.f32 -1.442695, %v359_v54  ;;  %v702_v57 = vpop.f32.mrb[6].mxu0 }
  0xf2   : > { %819 = vpow2.f32 %v641_v55  ;;  %v374_v58 = vadd.f32 %v702_v57, %v627_v38  ;;  %v368_v59 = vpop.f32.mrb[7].mxu0 }
  0xf3   : > { %821 = vpow2.f32 %v640_v56  ;;  %v369_v60 = vadd.f32 %v627_v38, %v368_v59 }
  0xf4   : > { %v812_v61 = vpop.eup %811  ;;  %v643_v62 = vmul.f32 -1.442695, %v374_v58 }
  0xf5   : > { %v814_v63 = vpop.eup %813  ;;  %v402_v0 = vadd.f32 1.0, %v812_v61  ;;  %v642_v1 = vmul.f32 -1.442695, %v369_v60 }
  0xf6   : > { %v401_v2 = vadd.f32 1.0, %v814_v63  ;;  %823 = vpow2.f32 %v643_v62 }
  0xf7   : > { %825 = vrcp.f32 %v402_v0 }
  0xf8   : > { %v816_v3 = vpop.eup %815  ;;  %827 = vrcp.f32 %v401_v2 }
  0xf9   : > { %v818_v4 = vpop.eup %817  ;;  %v404_v5 = vadd.f32 1.0, %v816_v3  ;;  %829 = vpow2.f32 %v642_v1 }
  0xfa   : > { %v403_v6 = vadd.f32 1.0, %v818_v4 }
  0xfc   : > { %v820_v7 = vpop.eup %819  ;;  %831 = vrcp.f32 %v403_v6 }
  0xfd   : > { %v822_v8 = vpop.eup %821  ;;  %833 = vrcp.f32 %v404_v5  ;;  %v406_v9 = vadd.f32 1.0, %v820_v7 }
  0xfe   : > { %v405_v10 = vadd.f32 1.0, %v822_v8 }
 0x100   : > { %v824_v11 = vpop.eup %823  ;;  %835 = vrcp.f32 %v405_v10 }
 0x101   : > { %v826_v12 = vpop.eup %825  ;;  %837 = vrcp.f32 %v406_v9  ;;  %v408_v15 = vadd.f32 1.0, %v824_v11 }
 0x102   : > { %v828_v13 = vpop.eup %827 }
 0x103   : > { %v830_v14 = vpop.eup %829  ;;  %735 = vmatprep.mubr.f32.mxu0 %v828_v13 }
 0x104   : > { %v407_v16 = vadd.f32 1.0, %v830_v14  ;;  %736 = vmatmul.mubr.f32.vlgmr.msra.gmra.mrb[8].mxu0 %v826_v12 }
 0x106   : > { %v832_v17 = vpop.eup %831  ;;  %839 = vrcp.f32 %v407_v16 }
 0x107   : > { %v834_v18 = vpop.eup %833  ;;  %841 = vrcp.f32 %v408_v15  ;;  %738 = vmatprep.mubr.f32.mxu1 %v832_v17 }
 0x108   : > { %739 = vmatmul.mubr.f32.vlgmr.msra.gmra.mrb[0].mxu1 %v834_v18 }
 0x10a   : > { %v836_v19 = vpop.eup %835 }
 0x10b   : > { %v838_v20 = vpop.eup %837  ;;  %741 = vmatprep.mubr.f32.mxu1 %v836_v19 }
 0x10c   : > { %742 = vmatmul.mubr.f32.gmra.mrb[2].mxu1 %v838_v20 }
 0x110   : > { %v840_v21 = vpop.eup %839 }
 0x111   : > { %v842_v22 = vpop.eup %841  ;;  %744 = vmatprep.mubr.f32.mxu1 %v840_v21 }
 0x112   : > { %745 = vmatmul.mubr.f32.gmra.mrb[4].mxu1 %v842_v22 }
 0x1d7   : > { %v737_v24 = vpop.f32.mrb[8].mxu0 }
 0x1d8   : > { %v520_v25 = vadd.f32 %v737_v24, %v644_v23  ;;  %v514_v26 = vpop.f32.mrb[9].mxu0 }
 0x1d9   : > { %v515_v27 = vadd.f32 %v644_v23, %v514_v26 }
 0x1da   : > { %555 = vst.msk [vmem:[%s226_s25 + $0x8] sm:$0xff] %vm553_vm1, %v520_v25 }
 0x1db   : > { %554 = vst.msk [vmem:[%s226_s25] sm:$0xff] %vm553_vm1, %v515_v27  ;;  %v740_v28 = vpop.f32.mrb[0].mxu1 }
 0x1dc   : > { %v530_v29 = vadd.f32 %v740_v28, %v644_v23  ;;  %v524_v30 = vpop.f32.mrb[1].mxu1 }
 0x1dd   : > { %v525_v31 = vadd.f32 %v644_v23, %v524_v30 }
 0x1de   : > { %557 = vst.msk [vmem:[%s226_s25 + $0x18] sm:$0xff] %vm553_vm1, %v530_v29 }
 0x1df   : > { %556 = vst.msk [vmem:[%s226_s25 + $0x10] sm:$0xff] %vm553_vm1, %v525_v31  ;;  %v743_v32 = vpop.f32.mrb[2].mxu1 }
 0x1e0   : > { %v540_v33 = vadd.f32 %v743_v32, %v644_v23  ;;  %v534_v34 = vpop.f32.mrb[3].mxu1 }
 0x1e1   : > { %v535_v35 = vadd.f32 %v644_v23, %v534_v34 }
 0x1e2   : > { %559 = vst.msk [vmem:[%s226_s25 + $0x28] sm:$0xff] %vm553_vm1, %v540_v33 }
 0x1e3   : > { %558 = vst.msk [vmem:[%s226_s25 + $0x20] sm:$0xff] %vm553_vm1, %v535_v35 }
 0x1e5   : > { %v746_v36 = vpop.f32.mrb[4].mxu1 }
 0x1e6   : > { %v550_v37 = vadd.f32 %v746_v36, %v644_v23  ;;  %v544_v38 = vpop.f32.mrb[5].mxu1 }
 0x1e7   : > { %v545_v39 = vadd.f32 %v644_v23, %v544_v38 }
 0x1e8   : > { %561 = vst.msk [vmem:[%s226_s25 + $0x38] sm:$0xff] %vm553_vm1, %v550_v37 }
 0x1e9   : > { %560 = vst.msk [vmem:[%s226_s25 + $0x30] sm:$0xff] %vm553_vm1, %v545_v39 }
 0x1ea PF: > { %s15_s18 = sadd.s32 1, %s849_s18  }
 0x1eb   : > { %p12_p4 = scmp.ge.s32.totalorder %s15_s18, 6  }
 0x1ed   :  { %14 = sbr.rel (!%p12_p4) target bundleno = 1 (0x1), region = 70 }

</bundles_post_ra>
